<compile_context>
chip_gen: v7x
topology: tpu7x:2x2x1
jax: 0.10.0
libtpu: 0.0.40
codegen_flags: <defaults>
</compile_context>

<pallas_src>
import jax
import jax.numpy as jnp
import numpy as np
from jax.experimental import pallas as pl
from jax.experimental.pallas import tpu as pltpu


def _wconv_kernel(patches_ref, w_ref, b_ref, out_ref):
    # patches_ref: [tm, K]   (compute_dtype) -- im2col rows for this tile
    # w_ref:       [K, tn]   (compute_dtype) -- pre-normalized weights
    # b_ref:       [1, tn]   (f32)           -- conv bias
    # out_ref:     [tm, tn]  (out_dtype)
    acc = jnp.dot(patches_ref[...], w_ref[...], preferred_element_type=jnp.float32)
    out_ref[...] = (acc + b_ref[...]).astype(out_ref.dtype)


def weighted_conv2d(x, v, g, b, *, padding=0, tm=1024,
                    compute_dtype=jnp.bfloat16, out_dtype=None,
                    channels_last=False):
    """Weight-norm Conv2d forward.

    x: [N, Cin, H, W] (NCHW), v: [Cout, Cin, kh, kw], g: [Cout], b: [Cout].
    Returns [N, Cout, Hout, Wout] (or NHWC if channels_last=True).
    """
    N, Cin, H, W = x.shape
    Cout, _, kh, kw = v.shape
    Hout = H + 2 * padding - kh + 1
    Wout = W + 2 * padding - kw + 1
    K = Cin * kh * kw
    M = N * Hout * Wout
    out_dtype = x.dtype if out_dtype is None else out_dtype

    # --- weight norm, hoisted out of the hot loop (constant across the grid) ---
    v2 = v.reshape(Cout, K).astype(jnp.float32)
    inv_norm = jax.lax.rsqrt(jnp.sum(v2 * v2, axis=1, keepdims=True))        # [Cout, 1]
    w = (v2 * (g.reshape(Cout, 1).astype(jnp.float32) * inv_norm)).T         # [K, Cout]

    # --- im2col via a single fused XLA op; features last (NHWC patches) ---
    # Feature ordering is (cin, kh, kw) -- identical to PyTorch's
    # weight.view(Cout, Cin*kh*kw) flattening (validated by
    # _check_patch_ordering in __main__).
    patches = jax.lax.conv_general_dilated_patches(
        x.astype(compute_dtype),
        (kh, kw),
        (1, 1),
        [(padding, padding), (padding, padding)],
        dimension_numbers=("NCHW", "OIHW", "NHWC"),
    ).reshape(M, K)

    # --- Cout handling: only pad/tile when large enough to warrant alignment ---
    if Cout >= 128:
        tn = 256 if Cout >= 256 else 128          # 256-aligned for v6e/v7x MXU
        C_used = pl.cdiv(Cout, tn) * tn
        w_mat = jnp.pad(w, ((0, 0), (0, C_used - Cout))).astype(compute_dtype)
        b_row = jnp.pad(b.astype(jnp.float32).reshape(1, Cout),
                        ((0, 0), (0, C_used - Cout)))
    else:
        tn = Cout
        C_used = Cout
        w_mat = w.astype(compute_dtype)
        b_row = b.astype(jnp.float32).reshape(1, Cout)

    # --- tile-size selection: multiple of 16 rows, bounded by a VMEM budget ---
    dsz = np.dtype(compute_dtype).itemsize
    osz = np.dtype(out_dtype).itemsize
    VMEM_TILE_BUDGET = 40 * 1024 * 1024           # safe under v7x 64 MiB/core
    per_row = 2 * (K * dsz + tn * osz)            # double-buffered in/out rows
    w_bytes = 2 * (K * tn * dsz + tn * 4)         # constant weight + bias blocks
    max_tm = max(16, ((VMEM_TILE_BUDGET - w_bytes) // max(per_row, 1) // 16) * 16)
    tm = min(tm, max_tm)
    if tm >= M:
        tm = M                                     # single full block (always legal)
    else:
        tm = max(16, (tm // 16) * 16)              # 16-row multiple for bf16 packing

    grid = (pl.cdiv(M, tm), C_used // tn)

    out_flat = pl.pallas_call(
        _wconv_kernel,
        out_shape=jax.ShapeDtypeStruct((M, C_used), out_dtype),
        grid_spec=pltpu.PrefetchScalarGridSpec(
            num_scalar_prefetch=0,
            grid=grid,
            in_specs=[
                pl.BlockSpec((tm, K), lambda i, j: (i, 0)),   # patches tile
                pl.BlockSpec((K, tn), lambda i, j: (0, j)),   # constant weights
                pl.BlockSpec((1, tn), lambda i, j: (0, j)),   # constant bias
            ],
            out_specs=pl.BlockSpec((tm, tn), lambda i, j: (i, j)),
        ),
        compiler_params=pltpu.CompilerParams(
            dimension_semantics=("parallel", "parallel"),
            vmem_limit_bytes=48 * 1024 * 1024,     # < v7x 64 MiB; > v5e 16 MiB default
        ),
    )(patches, w_mat, b_row)

    out = out_flat if C_used == Cout else out_flat[:, :Cout]
    out = out.reshape(N, Hout, Wout, Cout)
    if not channels_last:
        out = out.transpose(0, 3, 1, 2)            # module semantics are NCHW
    return out


def _reference(x, v, g, b, *, padding):
    # pure-JAX reference: weight_norm + conv2d (NCHW)
    norm = jnp.sqrt(jnp.sum(v * v, axis=(1, 2, 3), keepdims=True))
    w = v * (g.reshape(-1, 1, 1, 1) / norm)
    out = jax.lax.conv_general_dilated(
        x, w,
        window_strides=(1, 1),
        padding=[(padding, padding), (padding, padding)],
        dimension_numbers=("NCHW", "OIHW", "NCHW"),
    )
    return out + b.reshape(1, -1, 1, 1)


def _check_patch_ordering(x, w, *, padding):
    """Explicitly validate that conv_general_dilated_patches' feature order
    (cin-major, then kh, kw) matches PyTorch's weight.view(Cout, Cin*kh*kw)."""
    Cout, Cin, kh, kw = w.shape
    patches = jax.lax.conv_general_dilated_patches(
        x, (kh, kw), (1, 1), [(padding, padding)] * 2,
        dimension_numbers=("NCHW", "OIHW", "NHWC"))
    got = patches.reshape(-1, Cin * kh * kw) @ w.reshape(Cout, -1).T
    want = jax.lax.conv_general_dilated(
        x, w, (1, 1), [(padding, padding)] * 2,
        dimension_numbers=("NCHW", "OIHW", "NHWC")).reshape(-1, Cout)
    # An ordering mismatch produces O(1) errors; tolerance covers precision only.
    assert jnp.allclose(got, want, atol=2e-2, rtol=2e-2), \
        "conv_general_dilated_patches feature ordering mismatch"


if __name__ == "__main__":
    key = jax.random.PRNGKey(0)
    k_x, k_v, k_g, k_b = jax.random.split(key, 4)

    # Module config: WeightedConv2d(in_channels=4, out_channels=8, kernel_size=3, padding=1)
    N, Cin, H, W = 2, 4, 16, 16
    Cout, ksz, pad = 8, 3, 1

    x = jax.random.normal(k_x, (N, Cin, H, W), dtype=jnp.float32)
    v = jax.random.normal(k_v, (Cout, Cin, ksz, ksz), dtype=jnp.float32) * 0.1
    g = jax.random.uniform(k_g, (Cout,), dtype=jnp.float32, minval=0.5, maxval=1.5)
    b = jax.random.normal(k_b, (Cout,), dtype=jnp.float32) * 0.1

    # explicit im2col feature-ordering validation (independent of the kernel)
    _check_patch_ordering(x, v, padding=pad)

    ref = jax.block_until_ready(_reference(x, v, g, b, padding=pad))

    # fast path: bf16 MXU operands, f32 accumulation, f32 output (module dtype)
    out_bf16 = jax.block_until_ready(
        weighted_conv2d(x, v, g, b, padding=pad, compute_dtype=jnp.bfloat16))
    assert out_bf16.shape == (N, Cout, H, W), out_bf16.shape
    assert jnp.allclose(out_bf16, ref, atol=2e-2, rtol=2e-2), \
        float(jnp.max(jnp.abs(out_bf16 - ref)))

    # exact path: full f32 matmul for tight verification
    out_f32 = jax.block_until_ready(
        weighted_conv2d(x, v, g, b, padding=pad, compute_dtype=jnp.float32))
    assert jnp.allclose(out_f32, ref, atol=1e-4, rtol=1e-4), \
        float(jnp.max(jnp.abs(out_f32 - ref)))

    print("KERNEL_OK")
</pallas_src>

<mosaic_0001>
module attributes {stable_mosaic.version = 11 : i64} {
  func.func @_wconv_kernel(%arg0: i32, %arg1: i32, %arg2: memref<512x36xbf16, #tpu.memory_space<vmem>>, %arg3: memref<36x8xbf16, #tpu.memory_space<vmem>>, %arg4: memref<1x8xf32, #tpu.memory_space<vmem>>, %arg5: memref<512x8xf32, #tpu.memory_space<vmem>>) attributes {dimension_semantics = [#tpu.dimension_semantics<parallel>, #tpu.dimension_semantics<parallel>], iteration_bounds = array<i64: 1, 1>, scalar_prefetch = 0 : i64, scratch_operands = 0 : i64, tpu.core_type = #tpu.core_type<tc>, window_params = [{transform_indices = @transform_0, window_bounds = array<i64: 512, 36>}, {transform_indices = @transform_1, window_bounds = array<i64: 36, 8>}, {transform_indices = @transform_2, window_bounds = array<i64: 1, 8>}, {transform_indices = @transform_3, window_bounds = array<i64: 512, 8>}]} {
    %c0 = arith.constant 0 : index
    %c0_0 = arith.constant 0 : index
    %0 = vector.load %arg2[%c0, %c0_0] : memref<512x36xbf16, #tpu.memory_space<vmem>>, vector<512x36xbf16>
    %c0_1 = arith.constant 0 : index
    %c0_2 = arith.constant 0 : index
    %1 = vector.load %arg3[%c0_1, %c0_2] : memref<36x8xbf16, #tpu.memory_space<vmem>>, vector<36x8xbf16>
    %cst = arith.constant dense<0.000000e+00> : vector<512x8xf32>
    %2 = tpu.matmul %0, %1, %cst {dimension_numbers = #tpu.dot_dimension_numbers<[1], [0], [0], [1], [0, 0, 1, 1], [], []>} : vector<512x36xbf16>, vector<36x8xbf16>, vector<512x8xf32> -> vector<512x8xf32>
    %c0_3 = arith.constant 0 : index
    %c0_4 = arith.constant 0 : index
    %3 = vector.load %arg4[%c0_3, %c0_4] : memref<1x8xf32, #tpu.memory_space<vmem>>, vector<1x8xf32>
    %4 = vector.broadcast %3 : vector<1x8xf32> to vector<512x8xf32>
    %5 = arith.addf %2, %4 : vector<512x8xf32>
    %c0_5 = arith.constant 0 : index
    %c0_6 = arith.constant 0 : index
    %6 = vector.load %arg5[%c0_5, %c0_6] : memref<512x8xf32, #tpu.memory_space<vmem>>, vector<512x8xf32>
    tpu.vector_store %arg5[%c0_5, %c0_6], %5 {strides = array<i32>} : memref<512x8xf32, #tpu.memory_space<vmem>>, vector<512x8xf32>,
    return
  }
  func.func @transform_0(%arg0: i32, %arg1: i32) -> (i32, i32) {
    %c0_i32 = arith.constant 0 : i32
    %c0_i32_0 = arith.constant 0 : i32
    return %arg0, %c0_i32 : i32, i32
  }
  func.func @transform_1(%arg0: i32, %arg1: i32) -> (i32, i32) {
    %c0_i32 = arith.constant 0 : i32
    %c0_i32_0 = arith.constant 0 : i32
    return %c0_i32, %arg1 : i32, i32
  }
  func.func @transform_2(%arg0: i32, %arg1: i32) -> (i32, i32) {
    %c0_i32 = arith.constant 0 : i32
    %c0_i32_0 = arith.constant 0 : i32
    return %c0_i32, %arg1 : i32, i32
  }
  func.func @transform_3(%arg0: i32, %arg1: i32) -> (i32, i32) {
    %c0_i32 = arith.constant 0 : i32
    return %arg0, %arg1 : i32, i32
  }
}

</mosaic_0001>

<bundles_post_ra>
// kernel: tpu_custom_call.1
= control target key start
LH: loop header
LB: loop body
LE: loop exit
PB: predicated region body
PF: predicated region fallthrough
CT: control target
= control target key end

     0   :  { %vm266_vm0 = vcmask 293888   ;;  %vm363_vm1 = vcmask 1041408   ;;  %vm656_vm2 = vcmask 64512   ;;  %s1423_s1 = inlined_call_operand.vmem [shape: bf16[36,8], index: 1, kind: input, shape index: {}]   ;;  %s1424_s0 = inlined_call_operand.vmem [shape: bf16[512,36], index: 0, kind: input, shape index: {}]   ;;  %s1425_s2 = inlined_call_operand.vmem [shape: f32[1,8], index: 2, kind: input, shape index: {}]   ;;  %s1426_s3 = inlined_call_operand.vmem [shape: f32[512,8], index: 3, kind: output, shape index: {}]  }
   0x1   :  { %v906_v0 = vld [vmem:[%s1423_s1] sm:$0xff]   ;;  %v907_v1 = vld [vmem:[%s1423_s1 + $0x8] sm:$0xff]   ;;  %v908_v2 = vld [vmem:[%s1423_s1 + $0x10] ss:$0 sps:$4 sm:$0x33]  }
   0x2   :  { %828 = vmatprep.subr.bf16.mxu0 %v906_v0  ;;  %898 = vmatprep.subr.bf16.mxu1 %v906_v0  ;;  %v909_v3 = vld [vmem:[%s1424_s0] sm:$0xff]   ;;  %v365_v5 = vsel %vm363_vm1, %v908_v2, 0  ;;  %v911_v6 = vld [vmem:[%s1424_s0 + $0x8] sm:$0xff]   ;;  %v913_v8 = vld [vmem:[%s1424_s0 + $0x10] sm:$0xff]  }
   0x3   :  { %829 = vmatpush3.bf16.msra.mxu0 %v906_v0  ;;  %901 = vmatpush3.bf16.msra.mxu1 %v906_v0  ;;  %v910_v4 = vld [vmem:[%s1424_s0 + $0x80] sm:$0xff]   ;;  %v912_v7 = vld [vmem:[%s1424_s0 + $0x88] sm:$0xff]   ;;  %v914_v9 = vld [vmem:[%s1424_s0 + $0x90] sm:$0xff]  }
   0x4   :  { %830 = vmatprep.subr.bf16.mxu0 %v907_v1  ;;  %899 = vmatprep.subr.bf16.mxu1 %v907_v1  ;;  %v915_v10 = vld [vmem:[%s1424_s0 + $0x18] sm:$0xff]   ;;  %v917_v12 = vld [vmem:[%s1424_s0 + $0x20] sm:$0xff]   ;;  %v919_v14 = vld [vmem:[%s1424_s0 + $0x28] sm:$0xff]  }
   0x5   :  { %834 = vmatprep.mubr.msk.bf16.mxu0 %vm266_vm0, %v909_v3  ;;  %866 = vmatprep.mubr.msk.bf16.mxu1 %vm266_vm0, %v910_v4  ;;  %v916_v11 = vld [vmem:[%s1424_s0 + $0x98] sm:$0xff]   ;;  %v918_v13 = vld [vmem:[%s1424_s0 + $0xa0] sm:$0xff]   ;;  %v920_v15 = vld [vmem:[%s1424_s0 + $0xa8] sm:$0xff]  }
   0x6   :  { %v921_v16 = vld [vmem:[%s1424_s0 + $0x30] sm:$0xff]   ;;  %v923_v18 = vld [vmem:[%s1424_s0 + $0x38] sm:$0xff]   ;;  %v925_v20 = vld [vmem:[%s1424_s0 + $0x40] sm:$0xff]  }
   0x7   :  { %831 = vmatpush3.bf16.msra.mxu0 %v907_v1  ;;  %902 = vmatpush3.bf16.msra.mxu1 %v907_v1  ;;  %v922_v17 = vld [vmem:[%s1424_s0 + $0xb0] sm:$0xff]   ;;  %v924_v19 = vld [vmem:[%s1424_s0 + $0xb8] sm:$0xff]   ;;  %v926_v21 = vld [vmem:[%s1424_s0 + $0xc0] sm:$0xff]  }
   0x8   :  { %904 = vmatprep.subr.msk.bf16.mxu0 %vm363_vm1, %v908_v2  ;;  %905 = vmatprep.subr.msk.bf16.mxu1 %vm363_vm1, %v908_v2  ;;  %v927_v22 = vld [vmem:[%s1424_s0 + $0x48] sm:$0xff]   ;;  %v929_v24 = vld [vmem:[%s1424_s0 + $0x50] sm:$0xff]   ;;  %v931_v26 = vld [vmem:[%s1424_s0 + $0x58] sm:$0xff]  }
   0x9   :  { %v928_v23 = vld [vmem:[%s1424_s0 + $0xc8] sm:$0xff]   ;;  %v930_v25 = vld [vmem:[%s1424_s0 + $0xd0] sm:$0xff]   ;;  %v932_v27 = vld [vmem:[%s1424_s0 + $0xd8] sm:$0xff]  }
   0xa   :  { %v933_v28 = vld [vmem:[%s1424_s0 + $0x60] sm:$0xff]   ;;  %v935_v30 = vld [vmem:[%s1424_s0 + $0x68] sm:$0xff]   ;;  %v937_v32 = vld [vmem:[%s1424_s0 + $0x70] sm:$0xff]  }
   0xb   :  { %833 = vmatpush3.bf16.msra.mxu0 %v365_v5  ;;  %903 = vmatpush3.bf16.msra.mxu1 %v365_v5  ;;  %v934_v29 = vld [vmem:[%s1424_s0 + $0xe0] sm:$0xff]   ;;  %v936_v31 = vld [vmem:[%s1424_s0 + $0xe8] sm:$0xff]   ;;  %v938_v33 = vld [vmem:[%s1424_s0 + $0xf0] sm:$0xff]  }
   0xc   :  { %v939_v34 = vld [vmem:[%s1424_s0 + $0x78] sm:$0xff]   ;;  %v1101_v36 = vld [vmem:[%s1425_s2] ss:$0 sm:$0xff] }
   0xd   :  { %v940_v35 = vld [vmem:[%s1424_s0 + $0xf8] sm:$0xff]  }
   0xe   :  { %835 = vmatmul.mubr.msk.bf16.vlgmr.msra.gmra.mrb[0].mxu0 %vm266_vm0, %v911_v6  ;;  %867 = vmatmul.mubr.msk.bf16.vlgmr.msra.gmra.mrb[0].mxu1 %vm266_vm0, %v912_v7 }
   0xf   :  { %838 = vmatprep.mubr.msk.bf16.mxu0 %vm266_vm0, %v913_v8  ;;  %870 = vmatprep.mubr.msk.bf16.mxu1 %vm266_vm0, %v914_v9 }
  0x16   :  { %839 = vmatmul.mubr.msk.bf16.gmra.mrb[4].mxu0 %vm266_vm0, %v915_v10  ;;  %871 = vmatmul.mubr.msk.bf16.gmra.mrb[4].mxu1 %vm266_vm0, %v916_v11 }
  0x17   :  { %842 = vmatprep.mubr.msk.bf16.mxu0 %vm266_vm0, %v917_v12  ;;  %874 = vmatprep.mubr.msk.bf16.mxu1 %vm266_vm0, %v918_v13 }
  0x1e   :  { %843 = vmatmul.mubr.msk.bf16.gmra.mrb[8].mxu0 %vm266_vm0, %v919_v14  ;;  %875 = vmatmul.mubr.msk.bf16.gmra.mrb[8].mxu1 %vm266_vm0, %v920_v15 }
  0x1f   :  { %846 = vmatprep.mubr.msk.bf16.mxu0 %vm266_vm0, %v921_v16  ;;  %878 = vmatprep.mubr.msk.bf16.mxu1 %vm266_vm0, %v922_v17 }
  0x26   :  { %847 = vmatmul.mubr.msk.bf16.gmra.mrb[12].mxu0 %vm266_vm0, %v923_v18  ;;  %879 = vmatmul.mubr.msk.bf16.gmra.mrb[12].mxu1 %vm266_vm0, %v924_v19 }
  0x27   :  { %850 = vmatprep.mubr.msk.bf16.mxu0 %vm266_vm0, %v925_v20  ;;  %882 = vmatprep.mubr.msk.bf16.mxu1 %vm266_vm0, %v926_v21 }
  0x2e   :  { %851 = vmatmul.mubr.msk.bf16.gmra.mrb[16].mxu0 %vm266_vm0, %v927_v22  ;;  %883 = vmatmul.mubr.msk.bf16.gmra.mrb[16].mxu1 %vm266_vm0, %v928_v23 }
  0x2f   :  { %854 = vmatprep.mubr.msk.bf16.mxu0 %vm266_vm0, %v929_v24  ;;  %886 = vmatprep.mubr.msk.bf16.mxu1 %vm266_vm0, %v930_v25 }
  0x36   :  { %855 = vmatmul.mubr.msk.bf16.gmra.mrb[20].mxu0 %vm266_vm0, %v931_v26  ;;  %887 = vmatmul.mubr.msk.bf16.gmra.mrb[20].mxu1 %vm266_vm0, %v932_v27 }
  0x37   :  { %858 = vmatprep.mubr.msk.bf16.mxu0 %vm266_vm0, %v933_v28  ;;  %890 = vmatprep.mubr.msk.bf16.mxu1 %vm266_vm0, %v934_v29 }
  0x3e   :  { %859 = vmatmul.mubr.msk.bf16.gmra.mrb[24].mxu0 %vm266_vm0, %v935_v30  ;;  %891 = vmatmul.mubr.msk.bf16.gmra.mrb[24].mxu1 %vm266_vm0, %v936_v31 }
  0x3f   :  { %862 = vmatprep.mubr.msk.bf16.mxu0 %vm266_vm0, %v937_v32  ;;  %894 = vmatprep.mubr.msk.bf16.mxu1 %vm266_vm0, %v938_v33 }
  0x46   :  { %863 = vmatmul.mubr.msk.bf16.gmra.mrb[28].mxu0 %vm266_vm0, %v939_v34  ;;  %895 = vmatmul.mubr.msk.bf16.gmra.mrb[28].mxu1 %vm266_vm0, %v940_v35 }
  0xe1   :  { %v836_v37 = vpop.f32.mrb[0].mxu0  ;;  %v868_v38 = vpop.f32.mrb[0].mxu1 }
  0xe2   :  { %v410_v39 = vadd.f32 %v836_v37, %v1101_v36  ;;  %v538_v40 = vadd.f32 %v868_v38, %v1101_v36  ;;  %v401_v41 = vpop.f32.mrb[1].mxu0  ;;  %v529_v42 = vpop.f32.mrb[1].mxu1 }
  0xe3   :  { %v402_v43 = vadd.f32 %v1101_v36, %v401_v41  ;;  %v530_v44 = vadd.f32 %v1101_v36, %v529_v42  ;;  %v837_v45 = vpop.f32.mrb[2].mxu0  ;;  %v869_v46 = vpop.f32.mrb[2].mxu1 }
  0xe4   :  { %659 = vst.msk [vmem:[%s1426_s3 + $0x10] sm:$0xff] %vm656_vm2, %v410_v39  ;;  %691 = vst.msk [vmem:[%s1426_s3 + $0x110] sm:$0xff] %vm656_vm2, %v538_v40  ;;  %v413_v47 = vadd.f32 %v837_v45, %v1101_v36  ;;  %v541_v48 = vadd.f32 %v869_v46, %v1101_v36  ;;  %v404_v49 = vpop.f32.mrb[3].mxu0  ;;  %v532_v50 = vpop.f32.mrb[3].mxu1 }
  0xe5   :  { %657 = vst.msk [vmem:[%s1426_s3] sm:$0xff] %vm656_vm2, %v402_v43  ;;  %689 = vst.msk [vmem:[%s1426_s3 + $0x100] sm:$0xff] %vm656_vm2, %v530_v44  ;;  %v405_v51 = vadd.f32 %v1101_v36, %v404_v49  ;;  %v533_v52 = vadd.f32 %v1101_v36, %v532_v50 }
  0xe6   :  { %660 = vst.msk [vmem:[%s1426_s3 + $0x18] sm:$0xff] %vm656_vm2, %v413_v47  ;;  %692 = vst.msk [vmem:[%s1426_s3 + $0x118] sm:$0xff] %vm656_vm2, %v541_v48 }
  0xe7   :  { %658 = vst.msk [vmem:[%s1426_s3 + $0x8] sm:$0xff] %vm656_vm2, %v405_v51  ;;  %690 = vst.msk [vmem:[%s1426_s3 + $0x108] sm:$0xff] %vm656_vm2, %v533_v52 }
  0xe9   :  { %v840_v53 = vpop.f32.mrb[4].mxu0  ;;  %v872_v54 = vpop.f32.mrb[4].mxu1 }
  0xea   :  { %v426_v55 = vadd.f32 %v840_v53, %v1101_v36  ;;  %v554_v56 = vadd.f32 %v872_v54, %v1101_v36  ;;  %v417_v57 = vpop.f32.mrb[5].mxu0  ;;  %v545_v58 = vpop.f32.mrb[5].mxu1 }
  0xeb   :  { %v418_v59 = vadd.f32 %v1101_v36, %v417_v57  ;;  %v546_v60 = vadd.f32 %v1101_v36, %v545_v58  ;;  %v841_v61 = vpop.f32.mrb[6].mxu0  ;;  %v873_v62 = vpop.f32.mrb[6].mxu1 }
  0xec   :  { %663 = vst.msk [vmem:[%s1426_s3 + $0x30] sm:$0xff] %vm656_vm2, %v426_v55  ;;  %695 = vst.msk [vmem:[%s1426_s3 + $0x130] sm:$0xff] %vm656_vm2, %v554_v56  ;;  %v429_v63 = vadd.f32 %v841_v61, %v1101_v36  ;;  %v557_v0 = vadd.f32 %v873_v62, %v1101_v36  ;;  %v420_v1 = vpop.f32.mrb[7].mxu0  ;;  %v548_v2 = vpop.f32.mrb[7].mxu1 }
  0xed   :  { %661 = vst.msk [vmem:[%s1426_s3 + $0x20] sm:$0xff] %vm656_vm2, %v418_v59  ;;  %693 = vst.msk [vmem:[%s1426_s3 + $0x120] sm:$0xff] %vm656_vm2, %v546_v60  ;;  %v421_v3 = vadd.f32 %v1101_v36, %v420_v1  ;;  %v549_v4 = vadd.f32 %v1101_v36, %v548_v2 }
  0xee   :  { %664 = vst.msk [vmem:[%s1426_s3 + $0x38] sm:$0xff] %vm656_vm2, %v429_v63  ;;  %696 = vst.msk [vmem:[%s1426_s3 + $0x138] sm:$0xff] %vm656_vm2, %v557_v0 }
  0xef   :  { %662 = vst.msk [vmem:[%s1426_s3 + $0x28] sm:$0xff] %vm656_vm2, %v421_v3  ;;  %694 = vst.msk [vmem:[%s1426_s3 + $0x128] sm:$0xff] %vm656_vm2, %v549_v4 }
  0xf1   :  { %v844_v5 = vpop.f32.mrb[8].mxu0  ;;  %v876_v6 = vpop.f32.mrb[8].mxu1 }
  0xf2   :  { %v442_v7 = vadd.f32 %v844_v5, %v1101_v36  ;;  %v570_v8 = vadd.f32 %v876_v6, %v1101_v36  ;;  %v433_v9 = vpop.f32.mrb[9].mxu0  ;;  %v561_v10 = vpop.f32.mrb[9].mxu1 }
  0xf3   :  { %v434_v11 = vadd.f32 %v1101_v36, %v433_v9  ;;  %v562_v12 = vadd.f32 %v1101_v36, %v561_v10  ;;  %v845_v13 = vpop.f32.mrb[10].mxu0  ;;  %v877_v14 = vpop.f32.mrb[10].mxu1 }
  0xf4   :  { %667 = vst.msk [vmem:[%s1426_s3 + $0x50] sm:$0xff] %vm656_vm2, %v442_v7  ;;  %699 = vst.msk [vmem:[%s1426_s3 + $0x150] sm:$0xff] %vm656_vm2, %v570_v8  ;;  %v445_v15 = vadd.f32 %v845_v13, %v1101_v36  ;;  %v573_v16 = vadd.f32 %v877_v14, %v1101_v36  ;;  %v436_v17 = vpop.f32.mrb[11].mxu0  ;;  %v564_v18 = vpop.f32.mrb[11].mxu1 }
  0xf5   :  { %665 = vst.msk [vmem:[%s1426_s3 + $0x40] sm:$0xff] %vm656_vm2, %v434_v11  ;;  %697 = vst.msk [vmem:[%s1426_s3 + $0x140] sm:$0xff] %vm656_vm2, %v562_v12  ;;  %v437_v19 = vadd.f32 %v1101_v36, %v436_v17  ;;  %v565_v20 = vadd.f32 %v1101_v36, %v564_v18 }
  0xf6   :  { %668 = vst.msk [vmem:[%s1426_s3 + $0x58] sm:$0xff] %vm656_vm2, %v445_v15  ;;  %700 = vst.msk [vmem:[%s1426_s3 + $0x158] sm:$0xff] %vm656_vm2, %v573_v16 }
  0xf7   :  { %666 = vst.msk [vmem:[%s1426_s3 + $0x48] sm:$0xff] %vm656_vm2, %v437_v19  ;;  %698 = vst.msk [vmem:[%s1426_s3 + $0x148] sm:$0xff] %vm656_vm2, %v565_v20 }
  0xf9   :  { %v848_v21 = vpop.f32.mrb[12].mxu0  ;;  %v880_v22 = vpop.f32.mrb[12].mxu1 }
  0xfa   :  { %v458_v23 = vadd.f32 %v848_v21, %v1101_v36  ;;  %v586_v24 = vadd.f32 %v880_v22, %v1101_v36  ;;  %v449_v25 = vpop.f32.mrb[13].mxu0  ;;  %v577_v26 = vpop.f32.mrb[13].mxu1 }
  0xfb   :  { %v450_v27 = vadd.f32 %v1101_v36, %v449_v25  ;;  %v578_v28 = vadd.f32 %v1101_v36, %v577_v26  ;;  %v849_v29 = vpop.f32.mrb[14].mxu0  ;;  %v881_v30 = vpop.f32.mrb[14].mxu1 }
  0xfc   :  { %671 = vst.msk [vmem:[%s1426_s3 + $0x70] sm:$0xff] %vm656_vm2, %v458_v23  ;;  %703 = vst.msk [vmem:[%s1426_s3 + $0x170] sm:$0xff] %vm656_vm2, %v586_v24  ;;  %v461_v31 = vadd.f32 %v849_v29, %v1101_v36  ;;  %v589_v32 = vadd.f32 %v881_v30, %v1101_v36  ;;  %v452_v33 = vpop.f32.mrb[15].mxu0  ;;  %v580_v34 = vpop.f32.mrb[15].mxu1 }
  0xfd   :  { %669 = vst.msk [vmem:[%s1426_s3 + $0x60] sm:$0xff] %vm656_vm2, %v450_v27  ;;  %701 = vst.msk [vmem:[%s1426_s3 + $0x160] sm:$0xff] %vm656_vm2, %v578_v28  ;;  %v453_v35 = vadd.f32 %v1101_v36, %v452_v33  ;;  %v581_v37 = vadd.f32 %v1101_v36, %v580_v34 }
  0xfe   :  { %672 = vst.msk [vmem:[%s1426_s3 + $0x78] sm:$0xff] %vm656_vm2, %v461_v31  ;;  %704 = vst.msk [vmem:[%s1426_s3 + $0x178] sm:$0xff] %vm656_vm2, %v589_v32 }
  0xff   :  { %670 = vst.msk [vmem:[%s1426_s3 + $0x68] sm:$0xff] %vm656_vm2, %v453_v35  ;;  %702 = vst.msk [vmem:[%s1426_s3 + $0x168] sm:$0xff] %vm656_vm2, %v581_v37 }
 0x101   :  { %v852_v38 = vpop.f32.mrb[16].mxu0  ;;  %v884_v39 = vpop.f32.mrb[16].mxu1 }
 0x102   :  { %v474_v40 = vadd.f32 %v852_v38, %v1101_v36  ;;  %v602_v41 = vadd.f32 %v884_v39, %v1101_v36  ;;  %v465_v42 = vpop.f32.mrb[17].mxu0  ;;  %v593_v43 = vpop.f32.mrb[17].mxu1 }
 0x103   :  { %v466_v44 = vadd.f32 %v1101_v36, %v465_v42  ;;  %v594_v45 = vadd.f32 %v1101_v36, %v593_v43  ;;  %v853_v46 = vpop.f32.mrb[18].mxu0  ;;  %v885_v47 = vpop.f32.mrb[18].mxu1 }
 0x104   :  { %675 = vst.msk [vmem:[%s1426_s3 + $0x90] sm:$0xff] %vm656_vm2, %v474_v40  ;;  %707 = vst.msk [vmem:[%s1426_s3 + $0x190] sm:$0xff] %vm656_vm2, %v602_v41  ;;  %v477_v48 = vadd.f32 %v853_v46, %v1101_v36  ;;  %v605_v49 = vadd.f32 %v885_v47, %v1101_v36  ;;  %v468_v50 = vpop.f32.mrb[19].mxu0  ;;  %v596_v51 = vpop.f32.mrb[19].mxu1 }
 0x105   :  { %673 = vst.msk [vmem:[%s1426_s3 + $0x80] sm:$0xff] %vm656_vm2, %v466_v44  ;;  %705 = vst.msk [vmem:[%s1426_s3 + $0x180] sm:$0xff] %vm656_vm2, %v594_v45  ;;  %v469_v52 = vadd.f32 %v1101_v36, %v468_v50  ;;  %v597_v53 = vadd.f32 %v1101_v36, %v596_v51 }
 0x106   :  { %676 = vst.msk [vmem:[%s1426_s3 + $0x98] sm:$0xff] %vm656_vm2, %v477_v48  ;;  %708 = vst.msk [vmem:[%s1426_s3 + $0x198] sm:$0xff] %vm656_vm2, %v605_v49 }
 0x107   :  { %674 = vst.msk [vmem:[%s1426_s3 + $0x88] sm:$0xff] %vm656_vm2, %v469_v52  ;;  %706 = vst.msk [vmem:[%s1426_s3 + $0x188] sm:$0xff] %vm656_vm2, %v597_v53 }
 0x109   :  { %v856_v54 = vpop.f32.mrb[20].mxu0  ;;  %v888_v55 = vpop.f32.mrb[20].mxu1 }
 0x10a   :  { %v490_v56 = vadd.f32 %v856_v54, %v1101_v36  ;;  %v618_v57 = vadd.f32 %v888_v55, %v1101_v36  ;;  %v481_v58 = vpop.f32.mrb[21].mxu0  ;;  %v609_v59 = vpop.f32.mrb[21].mxu1 }
 0x10b   :  { %v482_v60 = vadd.f32 %v1101_v36, %v481_v58  ;;  %v610_v61 = vadd.f32 %v1101_v36, %v609_v59  ;;  %v857_v62 = vpop.f32.mrb[22].mxu0  ;;  %v889_v63 = vpop.f32.mrb[22].mxu1 }
 0x10c   :  { %679 = vst.msk [vmem:[%s1426_s3 + $0xb0] sm:$0xff] %vm656_vm2, %v490_v56  ;;  %711 = vst.msk [vmem:[%s1426_s3 + $0x1b0] sm:$0xff] %vm656_vm2, %v618_v57  ;;  %v493_v0 = vadd.f32 %v857_v62, %v1101_v36  ;;  %v621_v1 = vadd.f32 %v889_v63, %v1101_v36  ;;  %v484_v2 = vpop.f32.mrb[23].mxu0  ;;  %v612_v3 = vpop.f32.mrb[23].mxu1 }
 0x10d   :  { %677 = vst.msk [vmem:[%s1426_s3 + $0xa0] sm:$0xff] %vm656_vm2, %v482_v60  ;;  %709 = vst.msk [vmem:[%s1426_s3 + $0x1a0] sm:$0xff] %vm656_vm2, %v610_v61  ;;  %v485_v4 = vadd.f32 %v1101_v36, %v484_v2  ;;  %v613_v5 = vadd.f32 %v1101_v36, %v612_v3 }
 0x10e   :  { %680 = vst.msk [vmem:[%s1426_s3 + $0xb8] sm:$0xff] %vm656_vm2, %v493_v0  ;;  %712 = vst.msk [vmem:[%s1426_s3 + $0x1b8] sm:$0xff] %vm656_vm2, %v621_v1 }
 0x10f   :  { %678 = vst.msk [vmem:[%s1426_s3 + $0xa8] sm:$0xff] %vm656_vm2, %v485_v4  ;;  %710 = vst.msk [vmem:[%s1426_s3 + $0x1a8] sm:$0xff] %vm656_vm2, %v613_v5 }
 0x111   :  { %v860_v6 = vpop.f32.mrb[24].mxu0  ;;  %v892_v7 = vpop.f32.mrb[24].mxu1 }
 0x112   :  { %v506_v8 = vadd.f32 %v860_v6, %v1101_v36  ;;  %v634_v9 = vadd.f32 %v892_v7, %v1101_v36  ;;  %v497_v10 = vpop.f32.mrb[25].mxu0  ;;  %v625_v11 = vpop.f32.mrb[25].mxu1 }
 0x113   :  { %v498_v12 = vadd.f32 %v1101_v36, %v497_v10  ;;  %v626_v13 = vadd.f32 %v1101_v36, %v625_v11  ;;  %v861_v14 = vpop.f32.mrb[26].mxu0  ;;  %v893_v15 = vpop.f32.mrb[26].mxu1 }
 0x114   :  { %683 = vst.msk [vmem:[%s1426_s3 + $0xd0] sm:$0xff] %vm656_vm2, %v506_v8  ;;  %715 = vst.msk [vmem:[%s1426_s3 + $0x1d0] sm:$0xff] %vm656_vm2, %v634_v9  ;;  %v509_v16 = vadd.f32 %v861_v14, %v1101_v36  ;;  %v637_v17 = vadd.f32 %v893_v15, %v1101_v36  ;;  %v500_v18 = vpop.f32.mrb[27].mxu0  ;;  %v628_v19 = vpop.f32.mrb[27].mxu1 }
 0x115   :  { %681 = vst.msk [vmem:[%s1426_s3 + $0xc0] sm:$0xff] %vm656_vm2, %v498_v12  ;;  %713 = vst.msk [vmem:[%s1426_s3 + $0x1c0] sm:$0xff] %vm656_vm2, %v626_v13  ;;  %v501_v20 = vadd.f32 %v1101_v36, %v500_v18  ;;  %v629_v21 = vadd.f32 %v1101_v36, %v628_v19 }
 0x116   :  { %684 = vst.msk [vmem:[%s1426_s3 + $0xd8] sm:$0xff] %vm656_vm2, %v509_v16  ;;  %716 = vst.msk [vmem:[%s1426_s3 + $0x1d8] sm:$0xff] %vm656_vm2, %v637_v17 }
 0x117   :  { %682 = vst.msk [vmem:[%s1426_s3 + $0xc8] sm:$0xff] %vm656_vm2, %v501_v20  ;;  %714 = vst.msk [vmem:[%s1426_s3 + $0x1c8] sm:$0xff] %vm656_vm2, %v629_v21 }
 0x119   :  { %v864_v22 = vpop.f32.mrb[28].mxu0  ;;  %v896_v23 = vpop.f32.mrb[28].mxu1 }
 0x11a   :  { %v522_v24 = vadd.f32 %v864_v22, %v1101_v36  ;;  %v650_v25 = vadd.f32 %v896_v23, %v1101_v36  ;;  %v513_v26 = vpop.f32.mrb[29].mxu0  ;;  %v641_v27 = vpop.f32.mrb[29].mxu1 }
 0x11b   :  { %v514_v28 = vadd.f32 %v1101_v36, %v513_v26  ;;  %v642_v29 = vadd.f32 %v1101_v36, %v641_v27  ;;  %v865_v30 = vpop.f32.mrb[30].mxu0  ;;  %v897_v31 = vpop.f32.mrb[30].mxu1 }
 0x11c   :  { %687 = vst.msk [vmem:[%s1426_s3 + $0xf0] sm:$0xff] %vm656_vm2, %v522_v24  ;;  %719 = vst.msk [vmem:[%s1426_s3 + $0x1f0] sm:$0xff] %vm656_vm2, %v650_v25  ;;  %v525_v32 = vadd.f32 %v865_v30, %v1101_v36  ;;  %v653_v33 = vadd.f32 %v897_v31, %v1101_v36  ;;  %v516_v34 = vpop.f32.mrb[31].mxu0  ;;  %v644_v35 = vpop.f32.mrb[31].mxu1 }
 0x11d   :  { %685 = vst.msk [vmem:[%s1426_s3 + $0xe0] sm:$0xff] %vm656_vm2, %v514_v28  ;;  %717 = vst.msk [vmem:[%s1426_s3 + $0x1e0] sm:$0xff] %vm656_vm2, %v642_v29  ;;  %v517_v37 = vadd.f32 %v1101_v36, %v516_v34  ;;  %v645_v38 = vadd.f32 %v1101_v36, %v644_v35 }
 0x11e   :  { %688 = vst.msk [vmem:[%s1426_s3 + $0xf8] sm:$0xff] %vm656_vm2, %v525_v32  ;;  %720 = vst.msk [vmem:[%s1426_s3 + $0x1f8] sm:$0xff] %vm656_vm2, %v653_v33 }
 0x11f   :  { %686 = vst.msk [vmem:[%s1426_s3 + $0xe8] sm:$0xff] %vm656_vm2, %v517_v37  ;;  %718 = vst.msk [vmem:[%s1426_s3 + $0x1e8] sm:$0xff] %vm656_vm2, %v645_v38 }

</bundles_post_ra>
